<compile_context>
chip_gen: v6e
topology: v6e:2x2x1
jax: 0.10.0
libtpu: 0.0.40
codegen_flags: <defaults>
</compile_context>

<pallas_src>
import jax
import jax.numpy as jnp
from jax.experimental import pallas as pl
from jax.experimental.pallas import tpu as pltpu


def _round_up(x: int, m: int) -> int:
    return (x + m - 1) // m * m


def classifier_kernel(x_ref, w1_ref, b1_ref, w2t_ref, b2t_ref, o_ref):
    """sigmoid(relu(x @ W1 + b1) @ W2 + b2) with a transposed epilogue:
    the output tile is [n_class, TB] (classes on sublanes, batch on lanes)."""
    x = x_ref[...].astype(w1_ref.dtype)                    # f32 or bf16 MXU operand
    h = jnp.dot(x, w1_ref[...], preferred_element_type=jnp.float32)
    h = jnp.maximum(h + b1_ref[...], 0.0)                  # f32 bias + ReLU (VPU)
    # Second matmul in transposed form: [n_class, Hp] @ [Hp, TB] -> [n_class, TB].
    ht = h.T.astype(w2t_ref.dtype)                         # XLU transpose (idle slot)
    lt = jnp.dot(w2t_ref[...], ht, preferred_element_type=jnp.float32)
    o_ref[...] = jax.nn.sigmoid(lt + b2t_ref[...]).astype(o_ref.dtype)


def prepare_params(w1, b1, w2, b2, *, compute_dtype=jnp.float32):
    """One-time parameter packing (hoisted out of the per-call forward).

    w1:[input_dim,h_dim], b1:[1,h_dim], w2:[h_dim,n_class], b2:[1,n_class]
      -> w1p:[input_dim,Hp] compute_dtype, b1p:[1,Hp] f32,
         w2t:[n_class,Hp]   compute_dtype, b2t:[n_class,1] f32
    Hp = round_up(h_dim, 128).  Zero padding is mathematically inert: padded
    hidden units are relu(0)=0 and hit zero columns of W2^T."""
    input_dim, h_dim = w1.shape
    n_class = w2.shape[1]
    Hp = _round_up(h_dim, 128)
    w1p = jnp.pad(w1, ((0, 0), (0, Hp - h_dim))).astype(compute_dtype)
    b1p = jnp.pad(b1.reshape(1, h_dim), ((0, 0), (0, Hp - h_dim))).astype(jnp.float32)
    w2t = jnp.pad(w2.T, ((0, 0), (0, Hp - h_dim))).astype(compute_dtype)   # [n_class, Hp]
    b2t = b2.reshape(n_class, 1).astype(jnp.float32)
    return w1p, b1p, w2t, b2t


def _cost_estimate(B, input_dim, Hp, n_class, params_bytes, x_bytes):
    flops = 2 * B * input_dim * Hp + 2 * B * Hp * n_class
    return pl.CostEstimate(
        flops=flops,
        transcendentals=B * n_class,                        # sigmoid
        bytes_accessed=x_bytes + params_bytes + B * n_class * 4,
    )


def classifier_forward(x, params, *, batch_tile=512):
    """x:[B, input_dim] -> [B, n_class] f32.  `params` from prepare_params()."""
    w1p, b1p, w2t, b2t = params
    B, input_dim = x.shape
    Hp = w1p.shape[1]
    n_class = w2t.shape[0]

    params_bytes = sum(int(p.size) * p.dtype.itemsize for p in params)
    cost = _cost_estimate(B, input_dim, Hp, n_class, params_bytes,
                          int(x.size) * x.dtype.itemsize)

    if B <= batch_tile:
        # Small batch: single gridless call, every operand a whole-array VMEM block.
        out_t = pl.pallas_call(
            classifier_kernel,
            out_shape=jax.ShapeDtypeStruct((n_class, B), jnp.float32),
            in_specs=[pl.BlockSpec(memory_space=pltpu.MemorySpace.VMEM)] * 5,
            out_specs=pl.BlockSpec(memory_space=pltpu.MemorySpace.VMEM),
            cost_estimate=cost,
        )(x, w1p, b1p, w2t, b2t)
        return out_t.T                                      # [B, n_class]

    # Large batch: 1-D batch grid streams x / out tiles; (padded) weights and
    # biases stay VMEM-resident via constant index_maps.  No wrapper-side pad
    # of x: cdiv grid + Pallas boundary masking handle the ragged last tile
    # (its garbage intermediates are never written back).
    TB = batch_tile   # multiple of 8; 1024-2048 for v5e/v6e, ~256-512 on v7x
    grid = (pl.cdiv(B, TB),)
    out_t = pl.pallas_call(
        classifier_kernel,
        out_shape=jax.ShapeDtypeStruct((n_class, B), jnp.float32),
        grid=grid,
        in_specs=[
            pl.BlockSpec((TB, input_dim), lambda i: (i, 0)),     # streamed x
            pl.BlockSpec((input_dim, Hp), lambda i: (0, 0)),     # resident W1
            pl.BlockSpec((1, Hp), lambda i: (0, 0)),             # resident b1
            pl.BlockSpec((n_class, Hp), lambda i: (0, 0)),       # resident W2^T
            pl.BlockSpec((n_class, 1), lambda i: (0, 0)),        # resident b2^T
        ],
        out_specs=pl.BlockSpec((n_class, TB), lambda i: (0, i)), # lane-dense store
        compiler_params=pltpu.CompilerParams(
            dimension_semantics=("parallel",),                   # megacore batch split
        ),
        cost_estimate=cost,
    )(x, w1p, b1p, w2t, b2t)
    # TODO(synk): if input_dim*Hp grows past ~16 MiB of weights, add a K-tiled
    # grid axis with an f32 VMEM accumulator and pl.Buffered(1) resident specs.
    return out_t.T                                          # [B, n_class]


def init_params(key, input_dim, h_dim, n_class):
    # nn.Linear-style uniform(-1/sqrt(fan_in), 1/sqrt(fan_in)) init.
    k1, k2, k3, k4 = jax.random.split(key, 4)
    lim1 = 1.0 / jnp.sqrt(input_dim)
    lim2 = 1.0 / jnp.sqrt(h_dim)
    w1 = jax.random.uniform(k1, (input_dim, h_dim), jnp.float32, -lim1, lim1)
    b1 = jax.random.uniform(k2, (1, h_dim), jnp.float32, -lim1, lim1)
    w2 = jax.random.uniform(k3, (h_dim, n_class), jnp.float32, -lim2, lim2)
    b2 = jax.random.uniform(k4, (1, n_class), jnp.float32, -lim2, lim2)
    return w1, b1, w2, b2


def _reference(x, w1, b1, w2, b2):
    return jax.nn.sigmoid(jnp.maximum(x @ w1 + b1, 0.0) @ w2 + b2)


if __name__ == "__main__":
    input_dim, h_dim, n_class = 32, 64, 4
    batch = 8

    key = jax.random.PRNGKey(0)
    kx, kp, kx2 = jax.random.split(key, 3)
    x = jax.random.normal(kx, (batch, input_dim), jnp.float32)
    w1, b1, w2, b2 = init_params(kp, input_dim, h_dim, n_class)

    # Pad / pack parameters ONCE (hoisted out of the forward).
    params_f32 = prepare_params(w1, b1, w2, b2, compute_dtype=jnp.float32)

    fwd = jax.jit(classifier_forward, static_argnames=("batch_tile",))

    # Small-batch (gridless, whole-array VMEM) path.
    out = jax.block_until_ready(fwd(x, params_f32))
    ref = _reference(x, w1, b1, w2, b2)
    assert out.shape == (batch, n_class)
    assert jnp.allclose(out, ref, atol=1e-5, rtol=1e-5)

    # Batch-streamed path (resident weights) with a ragged last tile (200 % 128 != 0).
    x_big = jax.random.normal(kx2, (200, input_dim), jnp.float32)
    out_big = jax.block_until_ready(fwd(x_big, params_f32, batch_tile=128))
    ref_big = _reference(x_big, w1, b1, w2, b2)
    assert out_big.shape == (200, n_class)
    assert jnp.allclose(out_big, ref_big, atol=1e-5, rtol=1e-5)

    # bf16 streaming of weights / MXU operands (v6e/v7x native); f32 epilogue.
    params_bf16 = prepare_params(w1, b1, w2, b2, compute_dtype=jnp.bfloat16)
    out_bf16 = jax.block_until_ready(fwd(x_big, params_bf16, batch_tile=128))
    assert out_bf16.shape == (200, n_class)
    assert jnp.allclose(out_bf16, ref_big, atol=5e-2)

    print("KERNEL_OK")
</pallas_src>

<mosaic_0001>
module attributes {stable_mosaic.version = 11 : i64} {
  func.func @classifier_kernel(%arg0: memref<8x32xf32, #tpu.memory_space<vmem>>, %arg1: memref<32x128xf32, #tpu.memory_space<vmem>>, %arg2: memref<1x128xf32, #tpu.memory_space<vmem>>, %arg3: memref<4x128xf32, #tpu.memory_space<vmem>>, %arg4: memref<4x1xf32, #tpu.memory_space<vmem>>, %arg5: memref<4x8xf32, #tpu.memory_space<vmem>>) attributes {dimension_semantics = [], scalar_prefetch = 0 : i64, scratch_operands = 0 : i64, tpu.core_type = #tpu.core_type<tc>} {
    %c0 = arith.constant 0 : index
    %c0_0 = arith.constant 0 : index
    %0 = vector.load %arg0[%c0, %c0_0] : memref<8x32xf32, #tpu.memory_space<vmem>>, vector<8x32xf32>
    %c0_1 = arith.constant 0 : index
    %c0_2 = arith.constant 0 : index
    %1 = vector.load %arg1[%c0_1, %c0_2] : memref<32x128xf32, #tpu.memory_space<vmem>>, vector<32x128xf32>
    %cst = arith.constant dense<0.000000e+00> : vector<8x128xf32>
    %2 = tpu.matmul %0, %1, %cst {dimension_numbers = #tpu.dot_dimension_numbers<[1], [0], [0], [1], [0, 0, 1, 1], [], []>} : vector<8x32xf32>, vector<32x128xf32>, vector<8x128xf32> -> vector<8x128xf32>
    %c0_3 = arith.constant 0 : index
    %c0_4 = arith.constant 0 : index
    %3 = vector.load %arg2[%c0_3, %c0_4] : memref<1x128xf32, #tpu.memory_space<vmem>>, vector<1x128xf32>
    %4 = vector.broadcast %3 : vector<1x128xf32> to vector<8x128xf32>
    %5 = arith.addf %2, %4 : vector<8x128xf32>
    %cst_5 = arith.constant 0.000000e+00 : f32
    %6 = vector.broadcast %cst_5 : f32 to vector<8x128xf32>
    %7 = arith.maximumf %5, %6 : vector<8x128xf32>
    %8 = tpu.transpose %7, [1, 0] : vector<8x128xf32> -> vector<128x8xf32>
    %c0_6 = arith.constant 0 : index
    %c0_7 = arith.constant 0 : index
    %9 = vector.load %arg3[%c0_6, %c0_7] : memref<4x128xf32, #tpu.memory_space<vmem>>, vector<4x128xf32>
    %cst_8 = arith.constant dense<0.000000e+00> : vector<4x8xf32>
    %10 = tpu.matmul %9, %8, %cst_8 {dimension_numbers = #tpu.dot_dimension_numbers<[1], [0], [0], [1], [0, 0, 1, 1], [], []>} : vector<4x128xf32>, vector<128x8xf32>, vector<4x8xf32> -> vector<4x8xf32>
    %c0_9 = arith.constant 0 : index
    %c0_10 = arith.constant 0 : index
    %11 = vector.load %arg4[%c0_9, %c0_10] : memref<4x1xf32, #tpu.memory_space<vmem>>, vector<4x1xf32>
    %12 = vector.broadcast %11 : vector<4x1xf32> to vector<4x8xf32>
    %13 = arith.addf %10, %12 : vector<4x8xf32>
    %14 = arith.negf %13 : vector<4x8xf32>
    %15 = math.exp %14 : vector<4x8xf32>
    %cst_11 = arith.constant 1.000000e+00 : f32
    %16 = vector.broadcast %cst_11 : f32 to vector<4x8xf32>
    %17 = arith.addf %16, %15 : vector<4x8xf32>
    %18 = arith.divf %16, %17 : vector<4x8xf32>
    %c0_12 = arith.constant 0 : index
    %c0_13 = arith.constant 0 : index
    %19 = vector.load %arg5[%c0_12, %c0_13] : memref<4x8xf32, #tpu.memory_space<vmem>>, vector<4x8xf32>
    tpu.vector_store %arg5[%c0_12, %c0_13], %18 {strides = array<i32>} : memref<4x8xf32, #tpu.memory_space<vmem>>, vector<4x8xf32>,
    return
  }
}

</mosaic_0001>

<bundles_post_ra>
// kernel: classifier_forward.1
= control target key start
LH: loop header
LB: loop body
LE: loop exit
PB: predicated region body
PF: predicated region fallthrough
CT: control target
= control target key end

     0   :  { %10 = vsyncpa [#allocation3], 0  ;;  %s396_s0 = inlined_call_operand.hbm [shape: f32[8,32], index: 0, kind: input, shape index: {}]   ;;  %s397_s1 = inlined_call_operand.hbm [shape: f32[32,128], index: 1, kind: input, shape index: {}]   ;;  %s398_s2 = inlined_call_operand.vmem [shape: f32[1,128], index: 2, kind: input, shape index: {}]   ;;  %s399_s3 = inlined_call_operand.vmem [shape: f32[4,128], index: 3, kind: input, shape index: {}]   ;;  %s400_s4 = inlined_call_operand.vmem [shape: f32[4,1], index: 4, kind: input, shape index: {}]   ;;  %s401_s5 = inlined_call_operand.hbm [shape: f32[4,8], index: 5, kind: output, shape index: {}]  }
   0x1   :  { %11 = vsyncpa [#allocation6], 0 }
   0x2   :  { %12 = vsyncpa [#allocation4], 0  ;;  %s340_s18 = smov [#allocation2]   ;;  %s341_s20 = smov [#allocation5]  }
   0x3   :  { %s19_s19 = sshll.u32 %s340_s18, 4  ;;  %s28_s21 = sshll.u32 %s341_s20, 4  ;;  %s20_s19 = int_to_ptr.vmem [resolvable:$true] %s19_s19  ;;  %s29_s21 = int_to_ptr.vmem [resolvable:$true] %s28_s21 }
   0x4   :  { %s282_s22 = scalar_lea.vmem %s20_s19, 128  ;;  %p287_p1 = scmp.lt.s32.totalorder %s20_s19, %s20_s19 }
   0x5   :  { %p283_p0 = scmp.ne.s32.totalorder %s20_s19, %s282_s22  ;;  %p288_p2 = scmp.lt.s32.totalorder %s282_s22, %s282_s22 }
   0x7   :  { %p289_p3 = por %p288_p2, %p287_p1 }
   0x9   :  { %p290_p4 = pnand %p289_p3, %p283_p0 }
   0xb   :  { %293 = shalt.err (!%p290_p4)
}
   0xc   :  { %22 = dma.hbm_to_vmem [thread:$0]  %s396_s0, 128, %s20_s19, [#allocation3]  }
   0xd   :  { %s302_s25 = scalar_lea.vmem %s29_s21, 512  ;;  %p307_p6 = scmp.lt.s32.totalorder %s29_s21, %s29_s21 }
   0xe   :  { %p303_p5 = scmp.ne.s32.totalorder %s29_s21, %s302_s25  ;;  %p308_p7 = scmp.lt.s32.totalorder %s302_s25, %s302_s25 }
  0x10   :  { %p309_p8 = por %p308_p7, %p307_p6 }
  0x12   :  { %p310_p9 = pnand %p309_p8, %p303_p5 }
  0x14   :  { %313 = shalt.err (!%p310_p9)
}
  0x15   :  { %s342_s26 = smov 128   ;;  %s343_s27 = smov 8  }
  0x16   :  { %34 = dma.hbm_to_vmem [thread:$0]  %s397_s1, 512, %s29_s21, [#allocation6], %s342_s26, %s342_s26, %s343_s27  }
  0x17   :  { %334 = dma.done.wait [#allocation3], 128  }
  0x18   :  { %335 = vsyncadd [#allocation3], 4294967168 }
  0x19   :  { %336 = dma.done.wait [#allocation6], 512  }
  0x1a   :  { %337 = vsyncadd [#allocation6], 4294966784  ;;  %v344_v0 = vmov 0.0   ;;  %vm345_vm0 = vmmov 0   ;;  %v51_v1 = vld [vmem:[#allocation5 + $0x18] sm:$0xff]  ;;  %v50_v2 = vld [vmem:[#allocation5 + $0x10] sm:$0xff] }
  0x1b   :  { %245 = vmatprep.subr.mxu0 %v344_v0  ;;  %253 = vmatprep.mubr.msk.f32.mxu0 %vm345_vm0, %v344_v0  ;;  %v49_v3 = vld [vmem:[#allocation5 + $0x8] sm:$0xff]  ;;  %v48_v4 = vld [vmem:[#allocation5] sm:$0xff]  ;;  %v47_v5 = vld [vmem:[#allocation2] sm:$0xff]  ;;  %vm59_vm1 = vcmask 261120   ;;  %v346_v7 = vmov 0   ;;  %vm217_vm2 = vcmask 60416  }
  0x1c   :  { %256 = vmatprep.subr.mxu1 %v344_v0  ;;  %258 = vmatprep.mubr.msk.f32.mxu1 %vm345_vm0, %v344_v0  ;;  %v135_v6 = vld [vmem:[%s400_s4] sm:$0xf] }
  0x1d   :  { %246 = vmatpush3.msra.mxu0 %v51_v1  ;;  %269 = vset.pattern.permute.xlu0 %v346_v7  ;;  %v235_v8 = vld [vmem:[%s398_s2] ss:$0 sm:$0xff]  ;;  %s347_s2 = smov [#allocation7]  }
  0x1e   :  { %247 = vmatprep.subr.mxu0 %v344_v0  ;;  %138 = vperm.xlu0 %269, %v135_v6   ;;  %v134_v13 = vld [vmem:[%s399_s3] sm:$0xf]  ;;  %s225_s4 = sshll.u32 %s347_s2, 4  ;;  %s226_s4 = int_to_ptr.vmem [resolvable:$true] %s225_s4 }
  0x1f   :  { %248 = vmatpush3.msra.mxu0 %v50_v2  ;;  %s314_s9 = scalar_lea.vmem %s226_s4, 64  ;;  %p319_p11 = scmp.lt.s32.totalorder %s226_s4, %s226_s4 }
  0x20   :  { %249 = vmatprep.subr.mxu0 %v344_v0  ;;  %p315_p10 = scmp.ne.s32.totalorder %s226_s4, %s314_s9  ;;  %p320_p12 = scmp.lt.s32.totalorder %s314_s9, %s314_s9 }
  0x21   :  { %250 = vmatpush3.msra.mxu0 %v49_v3 }
  0x22   :  { %251 = vmatprep.subr.mxu0 %v344_v0  ;;  %p321_p13 = por %p320_p12, %p319_p11 }
  0x23   :  { %252 = vmatpush3.msra.mxu0 %v48_v4 }
  0x24   :  { %254 = vmatmul.mubr.msk.f32.vlgmr.msra.gmra.mxu0 %vm59_vm1, %v47_v5  ;;  %p322_p0 = pnand %p321_p13, %p315_p10 }
  0x99   :  { %v139_v14 = vpop.permute.xlu0 %138 }
  0xe4   :  { %v129_v9 = vpop.f32.mrf.mxu0 }
  0xe5   :  { %v130_v10 = vadd.f32 %v235_v8, %v129_v9 }
  0xe6   :  { %v255_v11 = vpop.f32.mrf.mxu0 }
  0xe7   :  { %v133_v12 = vmax.f32 %v130_v10, 0.0 }
  0xe9   :  { %257 = vmatpush3.xpose.msra.mxu1 %v133_v12 }
  0xec   :  { %259 = vmatmul.mubr.f32.vlgmr.msra.gmra.mxu1 %v134_v13 }
 0x1ac   :  { %v207_v15 = vpop.f32.mrf.mxu1 }
 0x1ad   :  { %v208_v16 = vadd.f32 %v207_v15, %v139_v14 }
 0x1ae   :  { %v260_v17 = vpop.f32.mrf.mxu1 }
 0x1af   :  { %v237_v18 = vmul.f32 -1.442695, %v208_v16 }
 0x1b1   :  { %270 = vpow2.f32 %v237_v18 }
 0x1be   :  { %v271_v19 = vpop.eup %270 }
 0x1bf   :  { %v214_v20 = vadd.f32 1.0, %v271_v19 }
 0x1c1   :  { %272 = vrcp.f32 %v214_v20 }
 0x1ce   :  { %v273_v21 = vpop.eup %272 }
 0x1cf   :  { %218 = vst.msk [vmem:[#allocation7] sm:$0xf] %vm217_vm2, %v273_v21 }
 0x1d0   :  { %325 = shalt.err (!%p322_p0)
}
 0x1d1   :  { %228 = dma.vmem_to_hbm [thread:$0]  %s226_s4, 64, %s401_s5, [#allocation4]  }
 0x1d2   :  { %338 = dma.done.wait [#allocation4], 64  }
 0x1d3   :  { %339 = vsyncadd [#allocation4], 4294967232 }
 0x1d4   :  { %232 = vsyncpa [#allocation3], 1 }
 0x1d5   :  { %233 = vsyncpa [#allocation6], 1 }
 0x1d6   :  { %234 = vsyncpa [#allocation4], 1 }

</bundles_post_ra>
